<compile_context>
chip_gen: v5e
topology: v5e:2x2
jax: 0.10.0
libtpu: 0.0.40
codegen_flags: <defaults>
</compile_context>

<pallas_src>
import functools

import jax
import jax.numpy as jnp
from jax import lax
from jax.experimental import pallas as pl
from jax.experimental.pallas import tpu as pltpu


def _round_up(x: int, m: int) -> int:
    return ((x + m - 1) // m) * m


def _vmem_capacity_bytes() -> int:
    """Physical per-TensorCore VMEM (generation-aware), with a safe fallback."""
    try:
        cap = int(pltpu.get_tpu_info().vmem_capacity_bytes)
        if cap > 0:
            return cap
    except Exception:
        pass
    return 64 << 20   # conservative default: v7x per-core VMEM


def _amp_step_kernel(a_ref, xk_ref, hh_ref, o_ref, acc_ref, *, lam):
    """One adaptive-message-passing iteration, one (row-tile, k-tile) step.

    a_ref  : (TM, TK)  bf16     tile of the normalized adjacency (streamed)
    xk_ref : (TK, Fp)  bf16     tile of the current features (streamed)
    hh_ref : (TM, Fp)  f32      row tile of the original features
    o_ref  : (TM, Fp)  bf16/f32 row tile of the updated features
    acc_ref: (TM, Fp)  f32      VMEM accumulator for A @ xk over the k axis
    """
    k = pl.program_id(1)

    @pl.when(k == 0)
    def _init():
        acc_ref[...] = jnp.zeros_like(acc_ref)

    # coef = gamma * 2 * (1 - lambda_amp) == 1 identically, so
    # y = x - coef * (x - A x) == A x; only the MXU matmul survives.
    acc_ref[...] += jnp.dot(a_ref[...], xk_ref[...],
                            preferred_element_type=jnp.float32)

    @pl.when(k == pl.num_programs(1) - 1)
    def _epilogue():
        hh = hh_ref[...]
        d = acc_ref[...] - hh                                    # y - hh
        # proximal_L21: score = max(||d|| - lam, 0)/||d||   (rows, ||d|| > 0)
        #            == max(1 - lam * rsqrt(sum d^2), 0)    (single EUP rsqrt)
        sumsq = jnp.sum(d * d, axis=1, keepdims=True)            # (TM, 1)
        score = jnp.maximum(1.0 - lam * lax.rsqrt(sumsq), 0.0)
        score = jnp.where(sumsq > 0.0, score, 0.0)
        o_ref[...] = (hh + score * d).astype(o_ref.dtype)


def _choose_tiles(n: int, fp: int, budget: int):
    """Pick (npad, tm, tk): padded size, row tile, contraction tile."""
    # Padding granularity: largest of {512, 256} with <=12.5% waste, else the
    # lane-dense floor of 128.
    g = 128
    for cand in (512, 256):
        if _round_up(n, cand) - n <= n // 8:
            g = cand
            break
    npad = _round_up(n, g)

    # Row tile: start at the granularity, guarantee >= 2 tiles on the
    # "parallel" axis (v7x megacore), keep f32 row-tile buffers in budget.
    tm = g
    while tm > 32 and npad // tm < 2:
        tm //= 2
    while tm > 32 and 20 * tm * fp > budget // 3:   # hh/out (2x2) + acc, f32
        tm //= 2

    # Contraction tile: as large as fits the budget (<= 4096); must be a
    # multiple of 128 (lanes) and divide npad exactly.
    tk_cap = 4096
    while tk_cap > 128 and (2 * tm * tk_cap + 2 * tk_cap * fp) * 2 > budget // 2:
        tk_cap //= 2
    if npad <= tk_cap:
        tk = npad
    else:
        m = npad // 128
        d_best = 1
        for d in range(1, tk_cap // 128 + 1):
            if m % d == 0:
                d_best = d
        tk = 128 * d_best
    return npad, tm, tk


def _adaptive_conv(x, adj, *, K=3, lambda_amp=0.1, normalize=True,
                   add_self_loops=True):
    """x: [N, F] float node features, adj: [N, N] dense adjacency."""
    n, f = x.shape
    gamma = 1.0 / (2.0 * (1.0 - lambda_amp))
    lam = gamma * lambda_amp          # coef = gamma*2*(1-lambda_amp) == 1

    # dense_gcn_norm (plain-JAX preprocessing).  For a static graph, hoist
    # this out: normalize once, cache, and call with normalize=False.
    a = adj.astype(jnp.float32)
    if normalize:
        if add_self_loops:
            a = a + jnp.eye(n, dtype=a.dtype)
        deg = jnp.sum(a, axis=1)
        dinv = jnp.where(deg > 0.0, lax.rsqrt(deg), 0.0)
        a = dinv[:, None] * a * dinv[None, :]

    if K == 0:
        return x

    # ---- tiling / padding -------------------------------------------------
    fp = _round_up(f, 128)
    cap = _vmem_capacity_bytes()
    budget = min(int(cap * 0.75), 100 << 20)   # ~96 MiB v5e/v6e, ~48 MiB v7x
    npad, tm, tk = _choose_tiles(n, fp, budget)

    # A streamed in bf16 (halves the dominant HBM stream); xk bf16 end-to-end.
    a_bf16 = jnp.zeros((npad, npad), jnp.bfloat16).at[:n, :n].set(
        a.astype(jnp.bfloat16))
    hh_f32 = jnp.zeros((npad, fp), jnp.float32).at[:n, :f].set(
        x.astype(jnp.float32))
    xk = jnp.zeros((npad, fp), jnp.bfloat16).at[:n, :f].set(
        x.astype(jnp.bfloat16))

    grid = (npad // tm, npad // tk)

    # Scoped-VMEM limit from the actual tile footprint (+ headroom), capped
    # by the generation-aware budget.
    tile_bytes = (2 * tm * tk * 2        # A tiles (bf16, double-buffered)
                  + 2 * tk * fp * 2      # xk tiles (bf16, double-buffered)
                  + 2 * tm * fp * 4      # hh row tiles (f32)
                  + 2 * tm * fp * 4      # out row tiles (<= f32)
                  + tm * fp * 4)         # f32 accumulator scratch
    vmem_limit = max(16 << 20, min(int(tile_bytes * 1.5) + (4 << 20), budget))

    kernel = functools.partial(_amp_step_kernel, lam=lam)

    def make_step(out_dtype):
        return pl.pallas_call(
            kernel,
            out_shape=jax.ShapeDtypeStruct((npad, fp), out_dtype),
            grid_spec=pltpu.PrefetchScalarGridSpec(
                num_scalar_prefetch=0,
                grid=grid,
                in_specs=[
                    pl.BlockSpec((tm, tk), lambda i, k: (i, k)),   # A tile
                    pl.BlockSpec((tk, fp), lambda i, k: (k, 0)),   # xk tile
                    pl.BlockSpec((tm, fp), lambda i, k: (i, 0)),   # hh tile
                ],
                out_specs=pl.BlockSpec((tm, fp), lambda i, k: (i, 0)),
                scratch_shapes=[pltpu.VMEM((tm, fp), jnp.float32)],
            ),
            compiler_params=pltpu.CompilerParams(
                dimension_semantics=("parallel", "arbitrary"),
                vmem_limit_bytes=vmem_limit,
            ),
        )

    # Intermediate iterations write bf16 (it is only the next MXU operand);
    # only the final iteration materializes f32.
    step_mid = make_step(jnp.bfloat16) if K > 1 else None
    step_last = make_step(jnp.float32)

    for t in range(K):                   # K is small & static
        step = step_last if t == K - 1 else step_mid
        xk = step(a_bf16, xk, hh_f32)

    return xk[:n, :f].astype(x.dtype)


adaptive_conv = jax.jit(
    _adaptive_conv,
    static_argnames=("K", "lambda_amp", "normalize", "add_self_loops"))


def adaptive_conv_ref(x, adj, *, K=3, lambda_amp=0.1, add_self_loops=True,
                      matmul_dtype=jnp.float32):
    """Pure-JAX reference mirroring the PyTorch module (dense branch)."""
    n = x.shape[0]
    a = adj.astype(jnp.float32)
    if add_self_loops:
        a = a + jnp.eye(n, dtype=a.dtype)
    deg = jnp.sum(a, axis=1)
    dinv = jnp.where(deg > 0.0, 1.0 / jnp.sqrt(deg), 0.0)
    a = dinv[:, None] * a * dinv[None, :]

    gamma = 1.0 / (2.0 * (1.0 - lambda_amp))
    lam = gamma * lambda_amp
    coef = gamma * 2.0 * (1.0 - lambda_amp)
    a_mm = a.astype(matmul_dtype)

    hh = x.astype(jnp.float32)
    xk = hh
    for _ in range(K):
        ax = jnp.dot(a_mm, xk.astype(matmul_dtype),
                     preferred_element_type=jnp.float32)
        y = xk - coef * (xk - ax)
        d = y - hh
        rn = jnp.linalg.norm(d, axis=1, keepdims=True)
        score = jnp.maximum(rn - lam, 0.0)
        score = jnp.where(rn > 0.0, score / jnp.where(rn > 0.0, rn, 1.0), 0.0)
        xk = hh + score * d
    return xk


if __name__ == "__main__":
    key = jax.random.PRNGKey(0)
    kx, ka = jax.random.split(key)

    N, F = 64, 32
    x = jax.random.normal(kx, (N, F), dtype=jnp.float32)

    # Deterministic random undirected graph (dense adjacency, no self loops).
    probs = jax.random.uniform(ka, (N, N))
    upper = jnp.triu(probs > 0.8, k=1).astype(jnp.float32)
    adj = upper + upper.T

    out = jax.block_until_ready(adaptive_conv(x, adj))
    assert out.shape == (N, F)
    assert bool(jnp.all(jnp.isfinite(out)))

    # Kernel-logic check: reference using the same bf16 matmul precision.
    ref_bf16 = adaptive_conv_ref(x, adj, matmul_dtype=jnp.bfloat16)
    assert jnp.allclose(out, ref_bf16, atol=2e-3, rtol=2e-3), (
        "bf16-ref mismatch, max abs diff = "
        + str(float(jnp.max(jnp.abs(out - ref_bf16)))))

    # End-to-end check against the full-precision module semantics
    # (bf16 MXU operands accumulate ~1e-2 relative error over K=3 steps).
    ref_f32 = adaptive_conv_ref(x, adj, matmul_dtype=jnp.float32)
    assert jnp.allclose(out, ref_f32, atol=5e-2, rtol=5e-2), (
        "f32-ref mismatch, max abs diff = "
        + str(float(jnp.max(jnp.abs(out - ref_f32)))))

    print("KERNEL_OK")
</pallas_src>

<mosaic_0001>
module attributes {stable_mosaic.version = 11 : i64} {
  func.func @_amp_step_kernel(%arg0: i32, %arg1: i32, %arg2: memref<64x128xbf16, #tpu.memory_space<vmem>>, %arg3: memref<128x128xbf16, #tpu.memory_space<vmem>>, %arg4: memref<64x128xf32, #tpu.memory_space<vmem>>, %arg5: memref<64x128xbf16, #tpu.memory_space<vmem>>, %arg6: memref<64x128xf32, #tpu.memory_space<vmem>>) attributes {dimension_semantics = [#tpu.dimension_semantics<parallel>, #tpu.dimension_semantics<arbitrary>], iteration_bounds = array<i64: 2, 1>, scalar_prefetch = 0 : i64, scratch_operands = 1 : i64, tpu.core_type = #tpu.core_type<tc>, window_params = [{transform_indices = @transform_0, window_bounds = array<i64: 64, 128>}, {transform_indices = @transform_1, window_bounds = array<i64: 128, 128>}, {transform_indices = @transform_2, window_bounds = array<i64: 64, 128>}, {transform_indices = @transform_3, window_bounds = array<i64: 64, 128>}]} {
    %c0_i32 = arith.constant 0 : i32
    %0 = arith.cmpi eq, %arg1, %c0_i32 : i32
    %1 = arith.extui %0 : i1 to i32
    %c0_i32_0 = arith.constant 0 : i32
    %2 = arith.cmpi ne, %1, %c0_i32_0 : i32
    scf.if %2 {
      %cst_10 = arith.constant 0.000000e+00 : f32
      %12 = vector.broadcast %cst_10 : f32 to vector<64x128xf32>
      %c0_11 = arith.constant 0 : index
      %c0_12 = arith.constant 0 : index
      %13 = vector.load %arg6[%c0_11, %c0_12] : memref<64x128xf32, #tpu.memory_space<vmem>>, vector<64x128xf32>
      tpu.vector_store %arg6[%c0_11, %c0_12], %12 {strides = array<i32>} : memref<64x128xf32, #tpu.memory_space<vmem>>, vector<64x128xf32>,
    } else {
    }
    %c0 = arith.constant 0 : index
    %c0_1 = arith.constant 0 : index
    %3 = vector.load %arg6[%c0, %c0_1] : memref<64x128xf32, #tpu.memory_space<vmem>>, vector<64x128xf32>
    %c0_2 = arith.constant 0 : index
    %c0_3 = arith.constant 0 : index
    %4 = vector.load %arg2[%c0_2, %c0_3] : memref<64x128xbf16, #tpu.memory_space<vmem>>, vector<64x128xbf16>
    %c0_4 = arith.constant 0 : index
    %c0_5 = arith.constant 0 : index
    %5 = vector.load %arg3[%c0_4, %c0_5] : memref<128x128xbf16, #tpu.memory_space<vmem>>, vector<128x128xbf16>
    %cst = arith.constant dense<0.000000e+00> : vector<64x128xf32>
    %6 = tpu.matmul %4, %5, %cst {dimension_numbers = #tpu.dot_dimension_numbers<[1], [0], [0], [1], [0, 0, 1, 1], [], []>} : vector<64x128xbf16>, vector<128x128xbf16>, vector<64x128xf32> -> vector<64x128xf32>
    %7 = arith.addf %3, %6 : vector<64x128xf32>
    %c0_6 = arith.constant 0 : index
    %c0_7 = arith.constant 0 : index
    %8 = vector.load %arg6[%c0_6, %c0_7] : memref<64x128xf32, #tpu.memory_space<vmem>>, vector<64x128xf32>
    tpu.vector_store %arg6[%c0_6, %c0_7], %7 {strides = array<i32>} : memref<64x128xf32, #tpu.memory_space<vmem>>, vector<64x128xf32>,
    %c0_i32_8 = arith.constant 0 : i32
    %9 = arith.cmpi eq, %arg1, %c0_i32_8 : i32
    %10 = arith.extui %9 : i1 to i32
    %c0_i32_9 = arith.constant 0 : i32
    %11 = arith.cmpi ne, %10, %c0_i32_9 : i32
    scf.if %11 {
      %c0_10 = arith.constant 0 : index
      %c0_11 = arith.constant 0 : index
      %12 = vector.load %arg4[%c0_10, %c0_11] : memref<64x128xf32, #tpu.memory_space<vmem>>, vector<64x128xf32>
      %c0_12 = arith.constant 0 : index
      %c0_13 = arith.constant 0 : index
      %13 = vector.load %arg6[%c0_12, %c0_13] : memref<64x128xf32, #tpu.memory_space<vmem>>, vector<64x128xf32>
      %14 = arith.subf %13, %12 : vector<64x128xf32>
      %15 = arith.mulf %14, %14 : vector<64x128xf32>
      %cst_14 = arith.constant dense<0.000000e+00> : vector<64xf32>
      %16 = vector.multi_reduction <add>, %15, %cst_14 [1] : vector<64x128xf32> to vector<64xf32>
      %17 = vector.shape_cast %16 : vector<64xf32> to vector<64x1xf32>
      %18 = math.rsqrt %17 : vector<64x1xf32>
      %cst_15 = arith.constant 0.055555556 : f32
      %19 = vector.broadcast %cst_15 : f32 to vector<64x1xf32>
      %20 = arith.mulf %19, %18 : vector<64x1xf32>
      %cst_16 = arith.constant 1.000000e+00 : f32
      %21 = vector.broadcast %cst_16 : f32 to vector<64x1xf32>
      %22 = arith.subf %21, %20 : vector<64x1xf32>
      %cst_17 = arith.constant 0.000000e+00 : f32
      %23 = vector.broadcast %cst_17 : f32 to vector<64x1xf32>
      %24 = arith.maximumf %22, %23 : vector<64x1xf32>
      %cst_18 = arith.constant 0.000000e+00 : f32
      %25 = vector.broadcast %cst_18 : f32 to vector<64x1xf32>
      %26 = arith.cmpf ogt, %17, %25 : vector<64x1xf32>
      %cst_19 = arith.constant 0.000000e+00 : f32
      %27 = vector.broadcast %cst_19 : f32 to vector<64x1xf32>
      %28 = arith.select %26, %24, %27 : vector<64x1xi1>, vector<64x1xf32>
      %29 = vector.broadcast %28 : vector<64x1xf32> to vector<64x128xf32>
      %30 = arith.mulf %29, %14 : vector<64x128xf32>
      %31 = arith.addf %12, %30 : vector<64x128xf32>
      %32 = arith.truncf %31 : vector<64x128xf32> to vector<64x128xbf16>
      %c0_20 = arith.constant 0 : index
      %c0_21 = arith.constant 0 : index
      %33 = vector.load %arg5[%c0_20, %c0_21] : memref<64x128xbf16, #tpu.memory_space<vmem>>, vector<64x128xbf16>
      tpu.vector_store %arg5[%c0_20, %c0_21], %32 {strides = array<i32>} : memref<64x128xbf16, #tpu.memory_space<vmem>>, vector<64x128xbf16>,
    } else {
    }
    return
  }
  func.func @transform_0(%arg0: i32, %arg1: i32) -> (i32, i32) {
    %c0_i32 = arith.constant 0 : i32
    return %arg0, %arg1 : i32, i32
  }
  func.func @transform_1(%arg0: i32, %arg1: i32) -> (i32, i32) {
    %c0_i32 = arith.constant 0 : i32
    %c0_i32_0 = arith.constant 0 : i32
    return %arg1, %c0_i32 : i32, i32
  }
  func.func @transform_2(%arg0: i32, %arg1: i32) -> (i32, i32) {
    %c0_i32 = arith.constant 0 : i32
    %c0_i32_0 = arith.constant 0 : i32
    return %arg0, %c0_i32 : i32, i32
  }
  func.func @transform_3(%arg0: i32, %arg1: i32) -> (i32, i32) {
    %c0_i32 = arith.constant 0 : i32
    %c0_i32_0 = arith.constant 0 : i32
    return %arg0, %c0_i32 : i32, i32
  }
}

module attributes {stable_mosaic.version = 11 : i64} {
  func.func @_amp_step_kernel(%arg0: i32, %arg1: i32, %arg2: memref<64x128xbf16, #tpu.memory_space<vmem>>, %arg3: memref<128x128xbf16, #tpu.memory_space<vmem>>, %arg4: memref<64x128xf32, #tpu.memory_space<vmem>>, %arg5: memref<64x128xf32, #tpu.memory_space<vmem>>, %arg6: memref<64x128xf32, #tpu.memory_space<vmem>>) attributes {dimension_semantics = [#tpu.dimension_semantics<parallel>, #tpu.dimension_semantics<arbitrary>], iteration_bounds = array<i64: 2, 1>, scalar_prefetch = 0 : i64, scratch_operands = 1 : i64, tpu.core_type = #tpu.core_type<tc>, window_params = [{transform_indices = @transform_0, window_bounds = array<i64: 64, 128>}, {transform_indices = @transform_1, window_bounds = array<i64: 128, 128>}, {transform_indices = @transform_2, window_bounds = array<i64: 64, 128>}, {transform_indices = @transform_3, window_bounds = array<i64: 64, 128>}]} {
    %c0_i32 = arith.constant 0 : i32
    %0 = arith.cmpi eq, %arg1, %c0_i32 : i32
    %1 = arith.extui %0 : i1 to i32
    %c0_i32_0 = arith.constant 0 : i32
    %2 = arith.cmpi ne, %1, %c0_i32_0 : i32
    scf.if %2 {
      %cst_10 = arith.constant 0.000000e+00 : f32
      %12 = vector.broadcast %cst_10 : f32 to vector<64x128xf32>
      %c0_11 = arith.constant 0 : index
      %c0_12 = arith.constant 0 : index
      %13 = vector.load %arg6[%c0_11, %c0_12] : memref<64x128xf32, #tpu.memory_space<vmem>>, vector<64x128xf32>
      tpu.vector_store %arg6[%c0_11, %c0_12], %12 {strides = array<i32>} : memref<64x128xf32, #tpu.memory_space<vmem>>, vector<64x128xf32>,
    } else {
    }
    %c0 = arith.constant 0 : index
    %c0_1 = arith.constant 0 : index
    %3 = vector.load %arg6[%c0, %c0_1] : memref<64x128xf32, #tpu.memory_space<vmem>>, vector<64x128xf32>
    %c0_2 = arith.constant 0 : index
    %c0_3 = arith.constant 0 : index
    %4 = vector.load %arg2[%c0_2, %c0_3] : memref<64x128xbf16, #tpu.memory_space<vmem>>, vector<64x128xbf16>
    %c0_4 = arith.constant 0 : index
    %c0_5 = arith.constant 0 : index
    %5 = vector.load %arg3[%c0_4, %c0_5] : memref<128x128xbf16, #tpu.memory_space<vmem>>, vector<128x128xbf16>
    %cst = arith.constant dense<0.000000e+00> : vector<64x128xf32>
    %6 = tpu.matmul %4, %5, %cst {dimension_numbers = #tpu.dot_dimension_numbers<[1], [0], [0], [1], [0, 0, 1, 1], [], []>} : vector<64x128xbf16>, vector<128x128xbf16>, vector<64x128xf32> -> vector<64x128xf32>
    %7 = arith.addf %3, %6 : vector<64x128xf32>
    %c0_6 = arith.constant 0 : index
    %c0_7 = arith.constant 0 : index
    %8 = vector.load %arg6[%c0_6, %c0_7] : memref<64x128xf32, #tpu.memory_space<vmem>>, vector<64x128xf32>
    tpu.vector_store %arg6[%c0_6, %c0_7], %7 {strides = array<i32>} : memref<64x128xf32, #tpu.memory_space<vmem>>, vector<64x128xf32>,
    %c0_i32_8 = arith.constant 0 : i32
    %9 = arith.cmpi eq, %arg1, %c0_i32_8 : i32
    %10 = arith.extui %9 : i1 to i32
    %c0_i32_9 = arith.constant 0 : i32
    %11 = arith.cmpi ne, %10, %c0_i32_9 : i32
    scf.if %11 {
      %c0_10 = arith.constant 0 : index
      %c0_11 = arith.constant 0 : index
      %12 = vector.load %arg4[%c0_10, %c0_11] : memref<64x128xf32, #tpu.memory_space<vmem>>, vector<64x128xf32>
      %c0_12 = arith.constant 0 : index
      %c0_13 = arith.constant 0 : index
      %13 = vector.load %arg6[%c0_12, %c0_13] : memref<64x128xf32, #tpu.memory_space<vmem>>, vector<64x128xf32>
      %14 = arith.subf %13, %12 : vector<64x128xf32>
      %15 = arith.mulf %14, %14 : vector<64x128xf32>
      %cst_14 = arith.constant dense<0.000000e+00> : vector<64xf32>
      %16 = vector.multi_reduction <add>, %15, %cst_14 [1] : vector<64x128xf32> to vector<64xf32>
      %17 = vector.shape_cast %16 : vector<64xf32> to vector<64x1xf32>
      %18 = math.rsqrt %17 : vector<64x1xf32>
      %cst_15 = arith.constant 0.055555556 : f32
      %19 = vector.broadcast %cst_15 : f32 to vector<64x1xf32>
      %20 = arith.mulf %19, %18 : vector<64x1xf32>
      %cst_16 = arith.constant 1.000000e+00 : f32
      %21 = vector.broadcast %cst_16 : f32 to vector<64x1xf32>
      %22 = arith.subf %21, %20 : vector<64x1xf32>
      %cst_17 = arith.constant 0.000000e+00 : f32
      %23 = vector.broadcast %cst_17 : f32 to vector<64x1xf32>
      %24 = arith.maximumf %22, %23 : vector<64x1xf32>
      %cst_18 = arith.constant 0.000000e+00 : f32
      %25 = vector.broadcast %cst_18 : f32 to vector<64x1xf32>
      %26 = arith.cmpf ogt, %17, %25 : vector<64x1xf32>
      %cst_19 = arith.constant 0.000000e+00 : f32
      %27 = vector.broadcast %cst_19 : f32 to vector<64x1xf32>
      %28 = arith.select %26, %24, %27 : vector<64x1xi1>, vector<64x1xf32>
      %29 = vector.broadcast %28 : vector<64x1xf32> to vector<64x128xf32>
      %30 = arith.mulf %29, %14 : vector<64x128xf32>
      %31 = arith.addf %12, %30 : vector<64x128xf32>
      %c0_20 = arith.constant 0 : index
      %c0_21 = arith.constant 0 : index
      %32 = vector.load %arg5[%c0_20, %c0_21] : memref<64x128xf32, #tpu.memory_space<vmem>>, vector<64x128xf32>
      tpu.vector_store %arg5[%c0_20, %c0_21], %31 {strides = array<i32>} : memref<64x128xf32, #tpu.memory_space<vmem>>, vector<64x128xf32>,
    } else {
    }
    return
  }
  func.func @transform_0(%arg0: i32, %arg1: i32) -> (i32, i32) {
    %c0_i32 = arith.constant 0 : i32
    return %arg0, %arg1 : i32, i32
  }
  func.func @transform_1(%arg0: i32, %arg1: i32) -> (i32, i32) {
    %c0_i32 = arith.constant 0 : i32
    %c0_i32_0 = arith.constant 0 : i32
    return %arg1, %c0_i32 : i32, i32
  }
  func.func @transform_2(%arg0: i32, %arg1: i32) -> (i32, i32) {
    %c0_i32 = arith.constant 0 : i32
    %c0_i32_0 = arith.constant 0 : i32
    return %arg0, %c0_i32 : i32, i32
  }
  func.func @transform_3(%arg0: i32, %arg1: i32) -> (i32, i32) {
    %c0_i32 = arith.constant 0 : i32
    %c0_i32_0 = arith.constant 0 : i32
    return %arg0, %c0_i32 : i32, i32
  }
}

</mosaic_0001>

<bundles_post_ra>
// kernel: _adaptive_conv.5
= control target key start
LH: loop header
LB: loop body
LE: loop exit
PB: predicated region body
PF: predicated region fallthrough
CT: control target
= control target key end

     0   :  { %s874_s12 = smov 0   ;;  %s876_s13 = smov 0   ;;  %s1107_s0 = inlined_call_operand.vmem [shape: bf16[128,128], index: 0, kind: input, shape index: {}]   ;;  %s1108_s1 = inlined_call_operand.vmem [shape: bf16[128,128], index: 1, kind: input, shape index: {}]   ;;  %s1109_s2 = inlined_call_operand.vmem [shape: f32[128,128], index: 2, kind: input, shape index: {}]   ;;  %s1110_s3 = inlined_call_operand.vmem [shape: f32[128,128], index: 3, kind: output, shape index: {}]  }
   0x1   :  { %s878_s14 = smov 0  }
   0x2 LB: > { %s25_s15 = sadd.s32 1, %s848_s13  ;;  %p697_p0 = scmp.ge.s32.totalorder %s852_s14, 1  ;;  %s852_s14 = sphi %s878_s14, %s13_s14   ;;  %s848_s13 = sphi %s876_s13, %s1112_s13   ;;  %s844_s12 = sphi %s874_s12, %s1111_s12  }
   0x3   : > { %p27_p1 = scmp.ge.s32.totalorder %s25_s15, 2  ;;  %p177_p2 = scmp.lt.s32.totalorder %s852_s14, 3 }
   0x5   : > { %s1114_s15 = smov (%p27_p1, %s25_s15), 0  ;;  %p178_p3 = pnand %p697_p0, %p177_p2 }
   0x6   : > { %s698_s24 = sshll.u32 (!%p178_p3), %s844_s12, 3 }
   0x7   : > { %181 = sbr.rel (%p178_p3) target bundleno = 342 (0x156), region = 32  ;;  %p215_p4 = scmp.lt.s32.totalorder (!%p178_p3), %s698_s24, 15 }
   0xc   : > { %v765_v0 = vld [vmem:[%s1108_s1 + $0x38] sm:$0xff]  ;;  %v764_v1 = vld [vmem:[%s1108_s1 + $0x30] sm:$0xff]  ;;  %v763_v2 = vld [vmem:[%s1108_s1 + $0x28] sm:$0xff]  ;;  %s1116_s24 = smov (!%p215_p4, %s698_s24), 15 }
   0xd   : > { %357 = vmatpush.bf16.msra.mxu0 %v765_v0  ;;  %766 = vmatpush.bf16.msra.mxu1 %v765_v0  ;;  %v762_v3 = vld [vmem:[%s1108_s1 + $0x20] sm:$0xff]  ;;  %v761_v4 = vld [vmem:[%s1108_s1 + $0x18] sm:$0xff]  ;;  %v760_v5 = vld [vmem:[%s1108_s1 + $0x10] sm:$0xff]  ;;  %s699_s4 = sshll.u32 %s1116_s24, 2  ;;  %s701_s10 = sshll.u32 %s1116_s24, 3 }
   0xe   : > { %767 = vmatpush.bf16.msra.mxu2 %v765_v0  ;;  %768 = vmatpush.bf16.msra.mxu3 %v765_v0  ;;  %v759_v6 = vld [vmem:[%s1108_s1 + $0x8] sm:$0xff]  ;;  %v758_v7 = vld [vmem:[%s1108_s1] sm:$0xff]  ;;  %s221_s9 = scalar_lea.vmem %s1107_s0, %s699_s4  ;;  %s233_s16 = scalar_lea.vmem %s1109_s2, %s701_s10 }
   0xf   : > { %v754_v8 = vld [vmem:[%s221_s9] sm:$0xff]  ;;  %v755_v9 = vld [vmem:[%s221_s9 + $0x8] sm:$0xff]  ;;  %v756_v10 = vld [vmem:[%s221_s9 + $0x10] sm:$0xff]  ;;  %s1059_s19 = scalar_lea.vmem %s1110_s3, %s701_s10 }
  0x10   : > { %v757_v11 = vld [vmem:[%s221_s9 + $0x18] sm:$0xff]  ;;  %v931_v12 = vld [vmem:[%s233_s16] sm:$0xff]  ;;  %v933_v13 = vld [vmem:[%s233_s16 + $0x10] sm:$0xff] }
  0x11   : > { %358 = vmatpush.bf16.msra.mxu0 %v764_v1  ;;  %769 = vmatpush.bf16.msra.mxu1 %v764_v1  ;;  %v945_v20 = vld [vmem:[%s233_s16 + $0x20] sm:$0xff]  ;;  %v947_v21 = vld [vmem:[%s233_s16 + $0x8] sm:$0xff]  ;;  %v949_v22 = vld [vmem:[%s233_s16 + $0x18] sm:$0xff] }
  0x12   : > { %770 = vmatpush.bf16.msra.mxu2 %v764_v1  ;;  %771 = vmatpush.bf16.msra.mxu3 %v764_v1  ;;  %v966_v33 = vld [vmem:[%s233_s16 + $0x30] sm:$0xff]  ;;  %v968_v34 = vld [vmem:[%s233_s16 + $0x28] sm:$0xff]  ;;  %v970_v35 = vld [vmem:[%s233_s16 + $0x38] sm:$0xff] }
  0x15   : > { %359 = vmatpush.bf16.msra.mxu0 %v763_v2  ;;  %772 = vmatpush.bf16.msra.mxu1 %v763_v2 }
  0x16   : > { %773 = vmatpush.bf16.msra.mxu2 %v763_v2  ;;  %774 = vmatpush.bf16.msra.mxu3 %v763_v2 }
  0x19   : > { %360 = vmatpush.bf16.msra.mxu0 %v762_v3  ;;  %775 = vmatpush.bf16.msra.mxu1 %v762_v3 }
  0x1a   : > { %776 = vmatpush.bf16.msra.mxu2 %v762_v3  ;;  %777 = vmatpush.bf16.msra.mxu3 %v762_v3 }
  0x1d   : > { %361 = vmatpush.bf16.msra.mxu0 %v761_v4  ;;  %778 = vmatpush.bf16.msra.mxu1 %v761_v4 }
  0x1e   : > { %779 = vmatpush.bf16.msra.mxu2 %v761_v4  ;;  %780 = vmatpush.bf16.msra.mxu3 %v761_v4 }
  0x21   : > { %362 = vmatpush.bf16.msra.mxu0 %v760_v5  ;;  %781 = vmatpush.bf16.msra.mxu1 %v760_v5 }
  0x22   : > { %782 = vmatpush.bf16.msra.mxu2 %v760_v5  ;;  %783 = vmatpush.bf16.msra.mxu3 %v760_v5 }
  0x25   : > { %363 = vmatpush.bf16.msra.mxu0 %v759_v6  ;;  %784 = vmatpush.bf16.msra.mxu1 %v759_v6 }
  0x26   : > { %785 = vmatpush.bf16.msra.mxu2 %v759_v6  ;;  %786 = vmatpush.bf16.msra.mxu3 %v759_v6 }
  0x29   : > { %364 = vmatpush.bf16.msra.mxu0 %v758_v7  ;;  %787 = vmatpush.bf16.msra.mxu1 %v758_v7 }
  0x2a   : > { %788 = vmatpush.bf16.msra.mxu2 %v758_v7  ;;  %789 = vmatpush.bf16.msra.mxu3 %v758_v7 }
  0x2c   : > { %365 = vmatmul.bf16.vlgmr.msra.gmra.mxu0 %v754_v8  ;;  %370 = vmatmul.bf16.vlgmr.msra.gmra.mxu1 %v755_v9 }
  0x2d   : > { %375 = vmatmul.bf16.vlgmr.msra.gmra.mxu2 %v756_v10  ;;  %380 = vmatmul.bf16.vlgmr.msra.gmra.mxu3 %v757_v11 }
  0xa9   : > { %v366_v14 = vpop.f32.mrf.mxu0  ;;  %v371_v15 = vpop.f32.mrf.mxu1 }
  0xaa   : > { %v936_v16 = vsub.f32 %v366_v14, %v931_v12  ;;  %v939_v17 = vsub.f32 %v371_v15, %v933_v13 }
  0xac   : > { %v431_v18 = vmul.f32 %v939_v17, %v939_v17  ;;  %v429_v19 = vmul.f32 %v936_v16, %v936_v16 }
  0xae   : > { %441 = vadd.xlane.f32.xlu1 %v431_v18  ;;  %437 = vadd.xlane.f32.xlu0 %v429_v19 }
  0xb0   : > { %v376_v23 = vpop.f32.mrf.mxu2  ;;  %v381_v24 = vpop.f32.mrf.mxu3 }
  0xb1   : > { %v952_v25 = vsub.f32 %v376_v23, %v945_v20  ;;  %v368_v26 = vpop.f32.mrf.mxu0  ;;  %v373_v27 = vpop.f32.mrf.mxu1  ;;  %v973_v36 = vsub.f32 %v381_v24, %v966_v33 }
  0xb2   : > { %v955_v28 = vsub.f32 %v368_v26, %v947_v21  ;;  %v958_v29 = vsub.f32 %v373_v27, %v949_v22 }
  0xb3   : > { %v433_v30 = vmul.f32 %v952_v25, %v952_v25  ;;  %v435_v43 = vmul.f32 %v973_v36, %v973_v36 }
  0xb4   : > { %v432_v31 = vmul.f32 %v958_v29, %v958_v29  ;;  %v430_v32 = vmul.f32 %v955_v28, %v955_v28 }
  0xb5   : > { %445 = vadd.xlane.f32.xlu2 %v433_v30 }
  0xb6   : > { %443 = vadd.xlane.f32.xlu1 %v432_v31  ;;  %439 = vadd.xlane.f32.xlu0 %v430_v32 }
  0xb8   : > { %v378_v37 = vpop.f32.mrf.mxu2  ;;  %v383_v38 = vpop.f32.mrf.mxu3 }
  0xb9   : > { %v976_v39 = vsub.f32 %v378_v37, %v968_v34  ;;  %v979_v40 = vsub.f32 %v383_v38, %v970_v35 }
  0xbb   : > { %v434_v41 = vmul.f32 %v976_v39, %v976_v39  ;;  %v436_v42 = vmul.f32 %v979_v40, %v979_v40 }
  0xbd   : > { %447 = vadd.xlane.f32.xlu2 %v434_v41 }
  0xbe   : > { %451 = vadd.xlane.f32.xlu1 %v436_v42  ;;  %449 = vadd.xlane.f32.xlu0 %v435_v43 }
 0x121   : > { %v987_v44 = vpop.xlane.xlu1 %441  ;;  %v989_v45 = vpop.xlane.xlu0 %437 }
 0x122   : > { %814 = vrsqrt.f32 %v987_v44  ;;  %vm479_vm1 = vweird.f32 %v987_v44  ;;  %vm559_vm3 = vcmp.gt.f32.partialorder %v987_v44, 0.0  ;;  %vm459_vm4 = vweird.f32 %v989_v45 }
 0x123   : > { %816 = vrsqrt.f32 %v989_v45  ;;  %vm557_vm6 = vcmp.gt.f32.partialorder %v989_v45, 0.0 }
 0x128   : > { %v815_v46 = vpop.eup %814  ;;  %v993_v47 = vpop.xlane.xlu2 %445 }
 0x129   : > { %v817_v48 = vpop.eup %816  ;;  %v474_v49 = vmul.f32 %v815_v46, %v987_v44  ;;  %818 = vrsqrt.f32 %v993_v47  ;;  %v997_v50 = vpop.xlane.xlu1 %443  ;;  %vm480_vm0 = vweird.f32 %v815_v46  ;;  %vm499_vm8 = vweird.f32 %v993_v47 }
 0x12a   : > { %v999_v51 = vpop.xlane.xlu0 %439  ;;  %v454_v52 = vmul.f32 %v817_v48, %v989_v45  ;;  %820 = vrsqrt.f32 %v997_v50  ;;  %vm460_vm2 = vweird.f32 %v817_v48  ;;  %vm481_vm5 = vmor %vm479_vm1, %vm480_vm0  ;;  %vm489_vm9 = vweird.f32 %v997_v50 }
 0x12b   : > { %v475_v53 = vmul.f32 %v815_v46, %v474_v49  ;;  %822 = vrsqrt.f32 %v999_v51  ;;  %vm461_vm7 = vmor %vm459_vm4, %vm460_vm2  ;;  %vm561_vm13 = vcmp.gt.f32.partialorder %v993_v47, 0.0  ;;  %vm560_vm15 = vcmp.gt.f32.partialorder %v997_v50, 0.0 }
 0x12c   : > { %v455_v54 = vmul.f32 %v817_v48, %v454_v52  ;;  %vm469_vm0 = vweird.f32 %v999_v51  ;;  %vm558_vm4 = vcmp.gt.f32.partialorder %v999_v51, 0.0 }
 0x12d   : > { %v476_v55 = vmul.f32 0.5, %v475_v53 }
 0x12e   : > { %v456_v56 = vmul.f32 0.5, %v455_v54 }
 0x12f   : > { %v819_v57 = vpop.eup %818  ;;  %v477_v58 = vsub.f32 1.5, %v476_v55 }
 0x130   : > { %v1004_v59 = vpop.eup %820  ;;  %v457_v60 = vsub.f32 1.5, %v456_v56  ;;  %v494_v61 = vmul.f32 %v819_v57, %v993_v47  ;;  %v1008_v62 = vpop.xlane.xlu2 %447  ;;  %vm500_vm10 = vweird.f32 %v819_v57 }
 0x131   : > { %v1010_v63 = vpop.eup %822  ;;  %v478_v0 = vmul.f32 %v815_v46, %v477_v58  ;;  %v484_v1 = vmul.f32 %v1004_v59, %v997_v50  ;;  %824 = vrsqrt.f32 %v1008_v62  ;;  %v1020_v5 = vpop.xlane.xlu1 %451  ;;  %vm490_vm11 = vweird.f32 %v1004_v59  ;;  %vm501_vm14 = vmor %vm499_vm8, %vm500_vm10 }
 0x132   : > { %v458_v2 = vmul.f32 %v817_v48, %v457_v60  ;;  %v495_v3 = vmul.f32 %v819_v57, %v494_v61  ;;  %v464_v4 = vmul.f32 %v1010_v63, %v999_v51  ;;  %v1027_v14 = vpop.xlane.xlu0 %449  ;;  %826 = vrsqrt.f32 %v1020_v5  ;;  %vm491_vm1 = vmor %vm489_vm9, %vm490_vm11 }
 0x133   : > { %v482_v6 = vsel %vm481_vm5, %v815_v46, %v478_v0  ;;  %v485_v7 = vmul.f32 %v1004_v59, %v484_v1  ;;  %vm470_vm12 = vweird.f32 %v1010_v63  ;;  %828 = vrsqrt.f32 %v1027_v14 }
 0x134   : > { %v535_v8 = vmul.f32 0.055555556, %v482_v6  ;;  %v462_v9 = vsel %vm461_vm7, %v817_v48, %v458_v2  ;;  %v496_v10 = vmul.f32 0.5, %v495_v3  ;;  %v465_v11 = vmul.f32 %v1010_v63, %v464_v4  ;;  %vm471_vm2 = vmor %vm469_vm0, %vm470_vm12 }
 0x135   : > { %v533_v15 = vmul.f32 0.055555556, %v462_v9  ;;  %v486_v18 = vmul.f32 0.5, %v485_v7  ;;  %vm509_vm5 = vweird.f32 %v1008_v62  ;;  %vm529_vm8 = vweird.f32 %v1020_v5 }
 0x136   : > { %v543_v19 = vsub.f32 1.0, %v535_v8  ;;  %v497_v23 = vsub.f32 1.5, %v496_v10  ;;  %v466_v24 = vmul.f32 0.5, %v465_v11  ;;  %vm562_vm11 = vcmp.gt.f32.partialorder %v1008_v62, 0.0 }
 0x137   : > { %v825_v26 = vpop.eup %824  ;;  %v541_v27 = vsub.f32 1.0, %v533_v15  ;;  %v487_v30 = vsub.f32 1.5, %v486_v18  ;;  %vm519_vm12 = vweird.f32 %v1027_v14 }
 0x138   : > { %v551_v31 = vmax.f32 %v543_v19, 0.0  ;;  %v498_v32 = vmul.f32 %v819_v57, %v497_v23  ;;  %v467_v37 = vsub.f32 1.5, %v466_v24  ;;  %v504_v38 = vmul.f32 %v825_v26, %v1008_v62  ;;  %v827_v52 = vpop.eup %826 }
 0x139   : > { %v549_v41 = vmax.f32 %v541_v27, 0.0  ;;  %v488_v42 = vmul.f32 %v1004_v59, %v487_v30  ;;  %v829_v58 = vpop.eup %828  ;;  %v524_v0 = vmul.f32 %v827_v52, %v1020_v5  ;;  %vm530_vm7 = vweird.f32 %v827_v52 }
 0x13a   : > { %v567_v43 = vsel %vm559_vm3, %v551_v31, 0.0  ;;  %v502_v46 = vsel %vm501_vm14, %v819_v57, %v498_v32  ;;  %v468_v48 = vmul.f32 %v1010_v63, %v467_v37  ;;  %v505_v49 = vmul.f32 %v825_v26, %v504_v38  ;;  %vm531_vm9 = vmor %vm529_vm8, %vm530_vm7 }
 0x13b   : > { %v575_v53 = vmul.f32 %v567_v43, %v939_v17  ;;  %v565_v54 = vsel %vm557_vm6, %v549_v41, 0.0  ;;  %v537_v55 = vmul.f32 0.055555556, %v502_v46  ;;  %v492_v56 = vsel %vm491_vm1, %v1004_v59, %v488_v42 }
 0x13c   : > { %v573_v44 = vmul.f32 %v565_v54, %v936_v16  ;;  %v536_v57 = vmul.f32 0.055555556, %v492_v56  ;;  %v472_v17 = vsel %vm471_vm2, %v1010_v63, %v468_v48  ;;  %v506_v45 = vmul.f32 0.5, %v505_v49 }
 0x13d   : > { %v583_v59 = vadd.f32 %v575_v53, %v933_v13  ;;  %v545_v60 = vsub.f32 1.0, %v537_v55  ;;  %v534_v61 = vmul.f32 0.055555556, %v472_v17  ;;  %vm510_vm3 = vweird.f32 %v825_v26 }
 0x13e   : > { %v581_v1 = vadd.f32 %v573_v44, %v931_v12  ;;  %v544_v2 = vsub.f32 1.0, %v536_v57  ;;  %v507_v3 = vsub.f32 1.5, %v506_v45  ;;  %v525_v6 = vmul.f32 %v827_v52, %v524_v0  ;;  %vm511_vm6 = vmor %vm509_vm5, %vm510_vm3 }
 0x13f   : > { %591 = vst [vmem:[%s1059_s19 + $0x10] sm:$0xff] %v583_v59  ;;  %v553_v4 = vmax.f32 %v545_v60, 0.0  ;;  %v542_v16 = vsub.f32 1.0, %v534_v61  ;;  %v514_v63 = vmul.f32 %v829_v58, %v1027_v14  ;;  %vm520_vm10 = vweird.f32 %v829_v58 }
 0x140   : > { %589 = vst [vmem:[%s1059_s19] sm:$0xff] %v581_v1  ;;  %v552_v7 = vmax.f32 %v544_v2, 0.0  ;;  %v508_v13 = vmul.f32 %v825_v26, %v507_v3  ;;  %v526_v9 = vmul.f32 0.5, %v525_v6  ;;  %vm564_vm14 = vcmp.gt.f32.partialorder %v1020_v5, 0.0 }
 0x141   : > { %v569_v8 = vsel %vm561_vm13, %v553_v4, 0.0  ;;  %v550_v12 = vmax.f32 %v542_v16, 0.0  ;;  %v515_v10 = vmul.f32 %v829_v58, %v514_v63  ;;  %vm521_vm13 = vmor %vm519_vm12, %vm520_vm10 }
 0x142   : > { %v577_v11 = vmul.f32 %v569_v8, %v952_v25  ;;  %v568_v15 = vsel %vm560_vm15, %v552_v7, 0.0  ;;  %v512_v18 = vsel %vm511_vm6, %v825_v26, %v508_v13  ;;  %v527_v24 = vsub.f32 1.5, %v526_v9 }
 0x143   : > { %v576_v51 = vmul.f32 %v568_v15, %v958_v29  ;;  %v566_v19 = vsel %vm558_vm4, %v550_v12, 0.0  ;;  %v538_v23 = vmul.f32 0.055555556, %v512_v18  ;;  %v516_v30 = vmul.f32 0.5, %v515_v10 }
 0x144   : > { %v585_v47 = vadd.f32 %v577_v11, %v945_v20  ;;  %v574_v27 = vmul.f32 %v566_v19, %v955_v28  ;;  %v528_v32 = vmul.f32 %v827_v52, %v527_v24  ;;  %vm563_vm15 = vcmp.gt.f32.partialorder %v1027_v14, 0.0 }
 0x145   : > { %v584_v31 = vadd.f32 %v576_v51, %v949_v22  ;;  %v546_v25 = vsub.f32 1.0, %v538_v23  ;;  %v517_v29 = vsub.f32 1.5, %v516_v30 }
 0x146   : > { %593 = vst [vmem:[%s1059_s19 + $0x20] sm:$0xff] %v585_v47  ;;  %v582_v50 = vadd.f32 %v574_v27, %v947_v21  ;;  %v532_v37 = vsel %vm531_vm9, %v827_v52, %v528_v32 }
 0x147   : > { %592 = vst [vmem:[%s1059_s19 + $0x18] sm:$0xff] %v584_v31  ;;  %v554_v26 = vmax.f32 %v546_v25, 0.0  ;;  %v540_v20 = vmul.f32 0.055555556, %v532_v37  ;;  %v518_v28 = vmul.f32 %v829_v58, %v517_v29 }
 0x148   : > { %590 = vst [vmem:[%s1059_s19 + $0x8] sm:$0xff] %v582_v50 }
 0x149   : > { %v570_v22 = vsel %vm562_vm11, %v554_v26, 0.0  ;;  %v548_v21 = vsub.f32 1.0, %v540_v20  ;;  %v522_v41 = vsel %vm521_vm13, %v829_v58, %v518_v28 }
 0x14a   : > { %v578_v38 = vmul.f32 %v570_v22, %v976_v39  ;;  %v539_v42 = vmul.f32 0.055555556, %v522_v41 }
 0x14b   : > { %v556_v46 = vmax.f32 %v548_v21, 0.0 }
 0x14c   : > { %v586_v43 = vadd.f32 %v578_v38, %v968_v34  ;;  %v547_v48 = vsub.f32 1.0, %v539_v42 }
 0x14d   : > { %v572_v62 = vsel %vm564_vm14, %v556_v46, 0.0 }
 0x14e   : > { %594 = vst [vmem:[%s1059_s19 + $0x28] sm:$0xff] %v586_v43  ;;  %v580_v49 = vmul.f32 %v572_v62, %v979_v40  ;;  %v555_v52 = vmax.f32 %v547_v48, 0.0 }
 0x150   : > { %v588_v39 = vadd.f32 %v580_v49, %v970_v35  ;;  %v571_v53 = vsel %vm563_vm15, %v555_v52, 0.0 }
 0x151   : > { %v579_v54 = vmul.f32 %v571_v53, %v973_v36 }
 0x152   : > { %596 = vst [vmem:[%s1059_s19 + $0x38] sm:$0xff] %v588_v39 }
 0x153   : > { %v587_v55 = vadd.f32 %v579_v54, %v966_v33 }
 0x155   : > { %595 = vst [vmem:[%s1059_s19 + $0x30] sm:$0xff] %v587_v55 }
 0x156 PF: > { %s13_s14 = sadd.s32 1, %s852_s14   ;;  %s1111_s12 = smov %s848_s13 }
 0x157   : > { %p10_p5 = scmp.ge.s32.totalorder %s13_s14, 4   ;;  %s1112_s13 = smov %s1114_s15 }
 0x159   :  { %12 = sbr.rel (!%p10_p5) target bundleno = 2 (0x2), region = 76 }

// kernel: _adaptive_conv.3
= control target key start
LH: loop header
LB: loop body
LE: loop exit
PB: predicated region body
PF: predicated region fallthrough
CT: control target
= control target key end

     0   :  { %s905_s12 = smov 0   ;;  %s907_s13 = smov 0   ;;  %s1119_s0 = inlined_call_operand.vmem [shape: bf16[128,128], index: 0, kind: input, shape index: {}]   ;;  %s1120_s1 = inlined_call_operand.vmem [shape: bf16[128,128], index: 1, kind: input, shape index: {}]   ;;  %s1121_s2 = inlined_call_operand.vmem [shape: f32[128,128], index: 2, kind: input, shape index: {}]   ;;  %s1122_s3 = inlined_call_operand.vmem [shape: bf16[128,128], index: 3, kind: output, shape index: {}]  }
   0x1   :  { %s909_s14 = smov 0  }
   0x2 LB: > { %s25_s15 = sadd.s32 1, %s879_s13  ;;  %p705_p0 = scmp.ge.s32.totalorder %s883_s14, 1  ;;  %s883_s14 = sphi %s909_s14, %s13_s14   ;;  %s879_s13 = sphi %s907_s13, %s1124_s13   ;;  %s875_s12 = sphi %s905_s12, %s1123_s12  }
   0x3   : > { %p27_p1 = scmp.ge.s32.totalorder %s25_s15, 2  ;;  %p177_p2 = scmp.lt.s32.totalorder %s883_s14, 3 }
   0x5   : > { %s1126_s15 = smov (%p27_p1, %s25_s15), 0  ;;  %p178_p3 = pnand %p705_p0, %p177_p2 }
   0x6   : > { %s706_s24 = sshll.u32 (!%p178_p3), %s875_s12, 3 }
   0x7   : > { %181 = sbr.rel (%p178_p3) target bundleno = 343 (0x157), region = 32  ;;  %p215_p4 = scmp.lt.s32.totalorder (!%p178_p3), %s706_s24, 15 }
   0xc   : > { %v773_v0 = vld [vmem:[%s1120_s1 + $0x38] sm:$0xff]  ;;  %v772_v1 = vld [vmem:[%s1120_s1 + $0x30] sm:$0xff]  ;;  %v771_v2 = vld [vmem:[%s1120_s1 + $0x28] sm:$0xff]  ;;  %s1128_s24 = smov (!%p215_p4, %s706_s24), 15 }
   0xd   : > { %357 = vmatpush.bf16.msra.mxu0 %v773_v0  ;;  %797 = vmatpush.bf16.msra.mxu1 %v773_v0  ;;  %v770_v3 = vld [vmem:[%s1120_s1 + $0x20] sm:$0xff]  ;;  %v769_v4 = vld [vmem:[%s1120_s1 + $0x18] sm:$0xff]  ;;  %v768_v5 = vld [vmem:[%s1120_s1 + $0x10] sm:$0xff]  ;;  %s707_s4 = sshll.u32 %s1128_s24, 2  ;;  %s709_s10 = sshll.u32 %s1128_s24, 3 }
   0xe   : > { %798 = vmatpush.bf16.msra.mxu2 %v773_v0  ;;  %799 = vmatpush.bf16.msra.mxu3 %v773_v0  ;;  %v767_v6 = vld [vmem:[%s1120_s1 + $0x8] sm:$0xff]  ;;  %v766_v7 = vld [vmem:[%s1120_s1] sm:$0xff]  ;;  %s221_s9 = scalar_lea.vmem %s1119_s0, %s707_s4  ;;  %s233_s16 = scalar_lea.vmem %s1121_s2, %s709_s10 }
   0xf   : > { %v762_v8 = vld [vmem:[%s221_s9] sm:$0xff]  ;;  %v763_v9 = vld [vmem:[%s221_s9 + $0x8] sm:$0xff]  ;;  %v764_v10 = vld [vmem:[%s221_s9 + $0x10] sm:$0xff]  ;;  %s1089_s19 = scalar_lea.vmem %s1122_s3, %s707_s4 }
  0x10   : > { %v765_v11 = vld [vmem:[%s221_s9 + $0x18] sm:$0xff]  ;;  %v962_v12 = vld [vmem:[%s233_s16] sm:$0xff]  ;;  %v964_v13 = vld [vmem:[%s233_s16 + $0x10] sm:$0xff] }
  0x11   : > { %358 = vmatpush.bf16.msra.mxu0 %v772_v1  ;;  %800 = vmatpush.bf16.msra.mxu1 %v772_v1  ;;  %v976_v20 = vld [vmem:[%s233_s16 + $0x20] sm:$0xff]  ;;  %v978_v21 = vld [vmem:[%s233_s16 + $0x8] sm:$0xff]  ;;  %v980_v22 = vld [vmem:[%s233_s16 + $0x18] sm:$0xff] }
  0x12   : > { %801 = vmatpush.bf16.msra.mxu2 %v772_v1  ;;  %802 = vmatpush.bf16.msra.mxu3 %v772_v1  ;;  %v997_v33 = vld [vmem:[%s233_s16 + $0x30] sm:$0xff]  ;;  %v999_v34 = vld [vmem:[%s233_s16 + $0x28] sm:$0xff]  ;;  %v1001_v35 = vld [vmem:[%s233_s16 + $0x38] sm:$0xff] }
  0x15   : > { %359 = vmatpush.bf16.msra.mxu0 %v771_v2  ;;  %803 = vmatpush.bf16.msra.mxu1 %v771_v2 }
  0x16   : > { %804 = vmatpush.bf16.msra.mxu2 %v771_v2  ;;  %805 = vmatpush.bf16.msra.mxu3 %v771_v2 }
  0x19   : > { %360 = vmatpush.bf16.msra.mxu0 %v770_v3  ;;  %806 = vmatpush.bf16.msra.mxu1 %v770_v3 }
  0x1a   : > { %807 = vmatpush.bf16.msra.mxu2 %v770_v3  ;;  %808 = vmatpush.bf16.msra.mxu3 %v770_v3 }
  0x1d   : > { %361 = vmatpush.bf16.msra.mxu0 %v769_v4  ;;  %809 = vmatpush.bf16.msra.mxu1 %v769_v4 }
  0x1e   : > { %810 = vmatpush.bf16.msra.mxu2 %v769_v4  ;;  %811 = vmatpush.bf16.msra.mxu3 %v769_v4 }
  0x21   : > { %362 = vmatpush.bf16.msra.mxu0 %v768_v5  ;;  %812 = vmatpush.bf16.msra.mxu1 %v768_v5 }
  0x22   : > { %813 = vmatpush.bf16.msra.mxu2 %v768_v5  ;;  %814 = vmatpush.bf16.msra.mxu3 %v768_v5 }
  0x25   : > { %363 = vmatpush.bf16.msra.mxu0 %v767_v6  ;;  %815 = vmatpush.bf16.msra.mxu1 %v767_v6 }
  0x26   : > { %816 = vmatpush.bf16.msra.mxu2 %v767_v6  ;;  %817 = vmatpush.bf16.msra.mxu3 %v767_v6 }
  0x29   : > { %364 = vmatpush.bf16.msra.mxu0 %v766_v7  ;;  %818 = vmatpush.bf16.msra.mxu1 %v766_v7 }
  0x2a   : > { %819 = vmatpush.bf16.msra.mxu2 %v766_v7  ;;  %820 = vmatpush.bf16.msra.mxu3 %v766_v7 }
  0x2c   : > { %365 = vmatmul.bf16.vlgmr.msra.gmra.mxu0 %v762_v8  ;;  %370 = vmatmul.bf16.vlgmr.msra.gmra.mxu1 %v763_v9 }
  0x2d   : > { %375 = vmatmul.bf16.vlgmr.msra.gmra.mxu2 %v764_v10  ;;  %380 = vmatmul.bf16.vlgmr.msra.gmra.mxu3 %v765_v11 }
  0xa9   : > { %v366_v14 = vpop.f32.mrf.mxu0  ;;  %v371_v15 = vpop.f32.mrf.mxu1 }
  0xaa   : > { %v967_v16 = vsub.f32 %v366_v14, %v962_v12  ;;  %v970_v17 = vsub.f32 %v371_v15, %v964_v13 }
  0xac   : > { %v431_v18 = vmul.f32 %v970_v17, %v970_v17  ;;  %v429_v19 = vmul.f32 %v967_v16, %v967_v16 }
  0xae   : > { %441 = vadd.xlane.f32.xlu1 %v431_v18  ;;  %437 = vadd.xlane.f32.xlu0 %v429_v19 }
  0xb0   : > { %v376_v23 = vpop.f32.mrf.mxu2  ;;  %v381_v24 = vpop.f32.mrf.mxu3 }
  0xb1   : > { %v983_v25 = vsub.f32 %v376_v23, %v976_v20  ;;  %v368_v26 = vpop.f32.mrf.mxu0  ;;  %v373_v27 = vpop.f32.mrf.mxu1  ;;  %v1004_v36 = vsub.f32 %v381_v24, %v997_v33 }
  0xb2   : > { %v986_v28 = vsub.f32 %v368_v26, %v978_v21  ;;  %v989_v29 = vsub.f32 %v373_v27, %v980_v22 }
  0xb3   : > { %v433_v30 = vmul.f32 %v983_v25, %v983_v25  ;;  %v435_v43 = vmul.f32 %v1004_v36, %v1004_v36 }
  0xb4   : > { %v432_v31 = vmul.f32 %v989_v29, %v989_v29  ;;  %v430_v32 = vmul.f32 %v986_v28, %v986_v28 }
  0xb5   : > { %445 = vadd.xlane.f32.xlu2 %v433_v30 }
  0xb6   : > { %443 = vadd.xlane.f32.xlu1 %v432_v31  ;;  %439 = vadd.xlane.f32.xlu0 %v430_v32 }
  0xb8   : > { %v378_v37 = vpop.f32.mrf.mxu2  ;;  %v383_v38 = vpop.f32.mrf.mxu3 }
  0xb9   : > { %v1007_v39 = vsub.f32 %v378_v37, %v999_v34  ;;  %v1010_v40 = vsub.f32 %v383_v38, %v1001_v35 }
  0xbb   : > { %v434_v41 = vmul.f32 %v1007_v39, %v1007_v39  ;;  %v436_v42 = vmul.f32 %v1010_v40, %v1010_v40 }
  0xbd   : > { %447 = vadd.xlane.f32.xlu2 %v434_v41 }
  0xbe   : > { %451 = vadd.xlane.f32.xlu1 %v436_v42  ;;  %449 = vadd.xlane.f32.xlu0 %v435_v43 }
 0x121   : > { %v1018_v44 = vpop.xlane.xlu1 %441  ;;  %v1020_v45 = vpop.xlane.xlu0 %437 }
 0x122   : > { %845 = vrsqrt.f32 %v1018_v44  ;;  %vm479_vm2 = vweird.f32 %v1018_v44  ;;  %vm459_vm4 = vweird.f32 %v1020_v45  ;;  %vm559_vm6 = vcmp.gt.f32.partialorder %v1018_v44, 0.0 }
 0x123   : > { %847 = vrsqrt.f32 %v1020_v45  ;;  %vm557_vm11 = vcmp.gt.f32.partialorder %v1020_v45, 0.0 }
 0x128   : > { %v846_v46 = vpop.eup %845  ;;  %v1024_v47 = vpop.xlane.xlu2 %445 }
 0x129   : > { %v848_v48 = vpop.eup %847  ;;  %v474_v49 = vmul.f32 %v846_v46, %v1018_v44  ;;  %849 = vrsqrt.f32 %v1024_v47  ;;  %v1028_v50 = vpop.xlane.xlu1 %443  ;;  %vm480_vm0 = vweird.f32 %v846_v46  ;;  %vm499_vm7 = vweird.f32 %v1024_v47 }
 0x12a   : > { %v1030_v51 = vpop.xlane.xlu0 %439  ;;  %v454_v52 = vmul.f32 %v848_v48, %v1020_v45  ;;  %851 = vrsqrt.f32 %v1028_v50  ;;  %vm460_vm1 = vweird.f32 %v848_v48  ;;  %vm481_vm3 = vmor %vm479_vm2, %vm480_vm0  ;;  %vm489_vm13 = vweird.f32 %v1028_v50 }
 0x12b   : > { %v475_v53 = vmul.f32 %v846_v46, %v474_v49  ;;  %853 = vrsqrt.f32 %v1030_v51  ;;  %vm461_vm5 = vmor %vm459_vm4, %vm460_vm1  ;;  %vm469_vm15 = vweird.f32 %v1030_v51  ;;  %vm560_vm0 = vcmp.gt.f32.partialorder %v1028_v50, 0.0 }
 0x12c   : > { %v455_v54 = vmul.f32 %v848_v48, %v454_v52  ;;  %vm561_vm2 = vcmp.gt.f32.partialorder %v1024_v47, 0.0 }
 0x12d   : > { %v476_v55 = vmul.f32 0.5, %v475_v53 }
 0x12e   : > { %v456_v56 = vmul.f32 0.5, %v455_v54 }
 0x12f   : > { %v850_v57 = vpop.eup %849  ;;  %v477_v58 = vsub.f32 1.5, %v476_v55 }
 0x130   : > { %v852_v59 = vpop.eup %851  ;;  %v457_v60 = vsub.f32 1.5, %v456_v56  ;;  %v494_v61 = vmul.f32 %v850_v57, %v1024_v47  ;;  %v1036_v62 = vpop.xlane.xlu2 %447  ;;  %vm500_vm8 = vweird.f32 %v850_v57 }
 0x131   : > { %v854_v63 = vpop.eup %853  ;;  %v478_v0 = vmul.f32 %v846_v46, %v477_v58  ;;  %v484_v1 = vmul.f32 %v852_v59, %v1028_v50  ;;  %855 = vrsqrt.f32 %v1036_v62  ;;  %v1043_v5 = vpop.xlane.xlu1 %451  ;;  %vm490_vm9 = vweird.f32 %v852_v59  ;;  %vm501_vm12 = vmor %vm499_vm7, %vm500_vm8 }
 0x132   : > { %v458_v2 = vmul.f32 %v848_v48, %v457_v60  ;;  %v495_v3 = vmul.f32 %v850_v57, %v494_v61  ;;  %v464_v4 = vmul.f32 %v854_v63, %v1030_v51  ;;  %v1047_v14 = vpop.xlane.xlu0 %449  ;;  %857 = vrsqrt.f32 %v1043_v5  ;;  %vm491_vm14 = vmor %vm489_vm13, %vm490_vm9 }
 0x133   : > { %v482_v6 = vsel %vm481_vm3, %v846_v46, %v478_v0  ;;  %v485_v7 = vmul.f32 %v852_v59, %v484_v1  ;;  %859 = vrsqrt.f32 %v1047_v14  ;;  %vm470_vm10 = vweird.f32 %v854_v63 }
 0x134   : > { %v535_v8 = vmul.f32 0.055555556, %v482_v6  ;;  %v462_v9 = vsel %vm461_vm5, %v848_v48, %v458_v2  ;;  %v496_v10 = vmul.f32 0.5, %v495_v3  ;;  %v465_v11 = vmul.f32 %v854_v63, %v464_v4  ;;  %vm471_vm1 = vmor %vm469_vm15, %vm470_vm10 }
 0x135   : > { %v533_v15 = vmul.f32 0.055555556, %v462_v9  ;;  %v486_v18 = vmul.f32 0.5, %v485_v7  ;;  %vm558_vm3 = vcmp.gt.f32.partialorder %v1030_v51, 0.0  ;;  %vm509_vm4 = vweird.f32 %v1036_v62 }
 0x136   : > { %v543_v19 = vsub.f32 1.0, %v535_v8  ;;  %v497_v23 = vsub.f32 1.5, %v496_v10  ;;  %v466_v24 = vmul.f32 0.5, %v465_v11  ;;  %vm529_vm9 = vweird.f32 %v1043_v5 }
 0x137   : > { %v856_v26 = vpop.eup %855  ;;  %v541_v27 = vsub.f32 1.0, %v533_v15  ;;  %v487_v30 = vsub.f32 1.5, %v486_v18  ;;  %vm563_vm15 = vcmp.gt.f32.partialorder %v1047_v14, 0.0 }
 0x138   : > { %v498_v31 = vmul.f32 %v850_v57, %v497_v23  ;;  %v467_v32 = vsub.f32 1.5, %v466_v24  ;;  %v504_v37 = vmul.f32 %v856_v26, %v1036_v62  ;;  %v551_v38 = vmax.f32 %v543_v19, 0.0  ;;  %v858_v48 = vpop.eup %857 }
 0x139   : > { %v488_v41 = vmul.f32 %v852_v59, %v487_v30  ;;  %v549_v49 = vmax.f32 %v541_v27, 0.0  ;;  %v524_v0 = vmul.f32 %v858_v48, %v1043_v5  ;;  %vm510_vm5 = vweird.f32 %v856_v26 }
 0x13a   : > { %v502_v42 = vsel %vm501_vm12, %v850_v57, %v498_v31  ;;  %v468_v43 = vmul.f32 %v854_v63, %v467_v32  ;;  %v505_v46 = vmul.f32 %v856_v26, %v504_v37  ;;  %v860_v57 = vpop.eup %859  ;;  %v567_v58 = vsel %vm559_vm6, %v551_v38, 0.0  ;;  %vm511_vm7 = vmor %vm509_vm4, %vm510_vm5 }
 0x13b   : > { %v537_v52 = vmul.f32 0.055555556, %v502_v42  ;;  %v492_v53 = vsel %vm491_vm14, %v852_v59, %v488_v41  ;;  %v565_v2 = vsel %vm557_vm11, %v549_v49, 0.0  ;;  %v525_v3 = vmul.f32 %v858_v48, %v524_v0 }
 0x13c   : > { %v536_v54 = vmul.f32 0.055555556, %v492_v53  ;;  %v472_v55 = vsel %vm471_vm1, %v854_v63, %v468_v43  ;;  %v506_v56 = vmul.f32 0.5, %v505_v46  ;;  %v514_v4 = vmul.f32 %v860_v57, %v1047_v14 }
 0x13d   : > { %v545_v60 = vsub.f32 1.0, %v537_v52  ;;  %v534_v61 = vmul.f32 0.055555556, %v472_v55  ;;  %v575_v6 = vmul.f32 %v567_v58, %v970_v17  ;;  %vm562_vm6 = vcmp.gt.f32.partialorder %v1036_v62, 0.0 }
 0x13e   : > { %v544_v59 = vsub.f32 1.0, %v536_v54  ;;  %v507_v1 = vsub.f32 1.5, %v506_v56  ;;  %v526_v10 = vmul.f32 0.5, %v525_v3  ;;  %v515_v11 = vmul.f32 %v860_v57, %v514_v4 }
 0x13f   : > { %v542_v63 = vsub.f32 1.0, %v534_v61  ;;  %v553_v8 = vmax.f32 %v545_v60, 0.0  ;;  %v573_v15 = vmul.f32 %v565_v2, %v967_v16  ;;  %vm530_vm8 = vweird.f32 %v858_v48 }
 0x140   : > { %v552_v44 = vmax.f32 %v544_v59, 0.0  ;;  %v508_v7 = vmul.f32 %v856_v26, %v507_v1  ;;  %v527_v24 = vsub.f32 1.5, %v526_v10  ;;  %v583_v27 = vadd.f32 %v575_v6, %v964_v13  ;;  %vm531_vm10 = vmor %vm529_vm9, %vm530_vm8 }
 0x141   : > { %v550_v9 = vmax.f32 %v542_v63, 0.0  ;;  %v516_v16 = vmul.f32 0.5, %v515_v11  ;;  %v569_v50 = vsel %vm561_vm2, %v553_v8, 0.0  ;;  %vm520_vm11 = vweird.f32 %v860_v57 }
 0x142   : > { %v568_v45 = vsel %vm560_vm0, %v552_v44, 0.0  ;;  %v512_v18 = vsel %vm511_vm7, %v856_v26, %v508_v7  ;;  %v528_v32 = vmul.f32 %v858_v48, %v527_v24  ;;  %vm519_vm12 = vweird.f32 %v1047_v14 }
 0x143   : > { %v576_v19 = vmul.f32 %v568_v45, %v989_v29  ;;  %v566_v17 = vsel %vm558_vm3, %v550_v9, 0.0  ;;  %v538_v23 = vmul.f32 0.055555556, %v512_v18  ;;  %v581_v29 = vadd.f32 %v573_v15, %v962_v12  ;;  %vm521_vm13 = vmor %vm519_vm12, %vm520_vm11 }
 0x144   : > { %v574_v30 = vmul.f32 %v566_v17, %v986_v28  ;;  %v517_v28 = vsub.f32 1.5, %v516_v16  ;;  %v532_v51 = vsel %vm531_vm10, %v858_v48, %v528_v32  ;;  %v577_v12 = vmul.f32 %v569_v50, %v983_v25 }
 0x145   : > { %v584_v26 = vadd.f32 %v576_v19, %v980_v22  ;;  %v546_v31 = vsub.f32 1.0, %v538_v23  ;;  %v540_v38 = vmul.f32 0.055555556, %v532_v51  ;;  %vm564_vm14 = vcmp.gt.f32.partialorder %v1043_v5, 0.0 }
 0x146   : > { %v582_v13 = vadd.f32 %v574_v30, %v978_v21  ;;  %v518_v41 = vmul.f32 %v860_v57, %v517_v28  ;;  %v585_v48 = vadd.f32 %v577_v12, %v976_v20 }
 0x147   : > { %v782_v47 = vpack.c.bf16 %v584_v26, %v583_v27  ;;  %v554_v22 = vmax.f32 %v546_v31, 0.0  ;;  %v548_v43 = vsub.f32 1.0, %v540_v38 }
 0x148   : > { %v777_v37 = vpack.c.bf16 %v582_v13, %v581_v29  ;;  %v522_v46 = vsel %vm521_vm13, %v860_v57, %v518_v41 }
 0x149   : > { %794 = vst [vmem:[%s1089_s19 + $0x8] sm:$0xff] %v782_v47   ;;  %v570_v42 = vsel %vm562_vm6, %v554_v22, 0.0  ;;  %v539_v49 = vmul.f32 0.055555556, %v522_v46  ;;  %v556_v52 = vmax.f32 %v548_v43, 0.0 }
 0x14a   : > { %778 = vst [vmem:[%s1089_s19] sm:$0xff] %v777_v37   ;;  %v578_v21 = vmul.f32 %v570_v42, %v1007_v39 }
 0x14b   : > { %v547_v53 = vsub.f32 1.0, %v539_v49  ;;  %v572_v62 = vsel %vm564_vm14, %v556_v52, 0.0 }
 0x14c   : > { %v586_v25 = vadd.f32 %v578_v21, %v999_v34  ;;  %v580_v55 = vmul.f32 %v572_v62, %v1010_v40 }
 0x14d   : > { %v555_v56 = vmax.f32 %v547_v53, 0.0 }
 0x14e   : > { %v787_v54 = vpack.c.bf16 %v586_v25, %v585_v48  ;;  %v588_v57 = vadd.f32 %v580_v55, %v1001_v35 }
 0x14f   : > { %v571_v39 = vsel %vm563_vm15, %v555_v56, 0.0 }
 0x150   : > { %795 = vst [vmem:[%s1089_s19 + $0x10] sm:$0xff] %v787_v54   ;;  %v579_v20 = vmul.f32 %v571_v39, %v1004_v36 }
 0x152   : > { %v587_v58 = vadd.f32 %v579_v20, %v997_v33 }
 0x154   : > { %v792_v34 = vpack.c.bf16 %v588_v57, %v587_v58 }
 0x156   : > { %796 = vst [vmem:[%s1089_s19 + $0x18] sm:$0xff] %v792_v34  }
 0x157 PF: > { %s13_s14 = sadd.s32 1, %s883_s14   ;;  %s1123_s12 = smov %s879_s13 }
 0x158   : > { %p10_p5 = scmp.ge.s32.totalorder %s13_s14, 4   ;;  %s1124_s13 = smov %s1126_s15 }
 0x15a   :  { %12 = sbr.rel (!%p10_p5) target bundleno = 2 (0x2), region = 76 }

</bundles_post_ra>
